<compile_context>
chip_gen: v6e
topology: v6e:2x2x1
jax: 0.10.0
libtpu: 0.0.40
codegen_flags: <defaults>
</compile_context>

<pallas_src>
import math

import jax
import jax.numpy as jnp
from jax.experimental import pallas as pl
from jax.experimental.pallas import tpu as pltpu


def nn_kernel(x_ref, p_ref, o_ref):
    x = x_ref[...]                    # (B, 4)

    # Static slices of the packed parameter slab (one vreg tile in VMEM).
    w1 = p_ref[0:4, 0:36]             # (4, 36)  fc1 weight, (in, out)
    b1 = p_ref[4:5, 0:36]             # (1, 36)  fc1 bias
    b3 = p_ref[5:6, 0:2]              # (1, 2)   fc3 bias
    w3 = p_ref[6:8, 0:36]             # (2, 36)  fc3 weight, (out, in)

    # fc1: (B,4) @ (4,36) + b1 as 4 independent VPU broadcast-multiplies,
    # combined with a tree add (breaks the serial accumulation chain).
    p0 = x[:, 0:1] * w1[0:1, :]
    p1 = x[:, 1:2] * w1[1:2, :]
    p2 = x[:, 2:3] * w1[2:3, :]
    p3 = x[:, 3:4] * w1[3:4, :]
    h = ((p0 + p1) + (p2 + p3)) + b1
    h = jnp.maximum(h, 0.0)           # relu, (B, 36)

    # fc3 off the MXU: per-output-column sublane-broadcast multiply + lane
    # reduction (XLU), N=2 columns.
    l0 = jnp.sum(h * w3[0:1, :], axis=-1, keepdims=True)   # (B, 1)
    l1 = jnp.sum(h * w3[1:2, :], axis=-1, keepdims=True)   # (B, 1)
    logits = jnp.concatenate([l0, l1], axis=-1) + b3        # (B, 2)

    # Softmax over dim=0 (batch axis), numerically stabilized, exact division.
    # NOTE: exact only because the whole batch lives in this single block.
    m = jnp.max(logits, axis=0, keepdims=True)
    e = jnp.exp(logits - m)
    s = jnp.sum(e, axis=0, keepdims=True)
    o_ref[...] = e / s


def nn_forward(x, param_slab):
    B = x.shape[0]
    vmem = lambda: pl.BlockSpec(memory_space=pltpu.MemorySpace.VMEM)
    # No grid: the whole problem fits in a handful of vregs; a single
    # invocation with whole-array VMEM blocks avoids all pipeline overhead.
    return pl.pallas_call(
        nn_kernel,
        out_shape=jax.ShapeDtypeStruct((B, 2), jnp.float32),
        in_specs=[vmem(), vmem()],
        out_specs=vmem(),
    )(x, param_slab)


def init_params(key):
    """Matches the PyTorch module:
       fc1 = Linear(4, 36), fc3 = Linear(36, 2)
       weights: xavier_uniform_ (explicit in the module's __init__)
       biases:  torch default uniform(-1/sqrt(fan_in), +1/sqrt(fan_in))."""
    k1, k2, k3, k4 = jax.random.split(key, 4)

    def xavier_t(key, fan_in, fan_out):
        bound = math.sqrt(6.0 / (fan_in + fan_out))
        # stored (in, out) == transpose of the torch (out, in) weight
        return jax.random.uniform(key, (fan_in, fan_out), jnp.float32, -bound, bound)

    def bias(key, fan_in, fan_out):
        bound = 1.0 / math.sqrt(fan_in)
        return jax.random.uniform(key, (fan_out,), jnp.float32, -bound, bound)

    w1_t = xavier_t(k1, 4, 36)        # (4, 36)
    b1 = bias(k2, 4, 36)              # (36,)
    w3_t = xavier_t(k3, 36, 2)        # (36, 2)
    w3 = w3_t.T                       # (2, 36) torch (out, in) layout for the slab
    b3 = bias(k4, 36, 2)              # (2,)
    return w1_t, b1, w3, b3


def pack_params(w1_t, b1, w3, b3):
    """Pack all parameters into one (8, 128) f32 slab (single vreg tile)."""
    slab = jnp.zeros((8, 128), jnp.float32)
    slab = slab.at[0:4, 0:36].set(w1_t)
    slab = slab.at[4, 0:36].set(b1)
    slab = slab.at[5, 0:2].set(b3)
    slab = slab.at[6:8, 0:36].set(w3)
    return slab


if __name__ == "__main__":
    key = jax.random.PRNGKey(0)
    kx, kp = jax.random.split(key)

    B = 8  # batch of states, each with 4 features (e.g. CartPole obs)
    x = jax.random.normal(kx, (B, 4), jnp.float32)
    w1_t, b1, w3, b3 = init_params(kp)
    slab = pack_params(w1_t, b1, w3, b3)

    out = nn_forward(x, slab)
    out = jax.block_until_ready(out)
    assert out.shape == (B, 2)

    # Sanity: softmax over dim=0 -> each of the 2 columns sums to ~1 (exact div).
    col_sums = jnp.sum(out, axis=0)
    assert jnp.allclose(col_sums, jnp.ones_like(col_sums), atol=1e-5)

    # Cross-check against a pure-JAX reference of the same math.
    ref_h = jnp.maximum(x @ w1_t + b1[None, :], 0.0)
    ref_logits = ref_h @ w3.T + b3[None, :]
    ref = jax.nn.softmax(ref_logits, axis=0)
    assert jnp.allclose(out, ref, atol=1e-5, rtol=1e-5)

    print("KERNEL_OK")
</pallas_src>

<mosaic_0001>
module attributes {stable_mosaic.version = 11 : i64} {
  func.func @nn_kernel(%arg0: memref<8x4xf32, #tpu.memory_space<vmem>>, %arg1: memref<8x128xf32, #tpu.memory_space<vmem>>, %arg2: memref<8x2xf32, #tpu.memory_space<vmem>>) attributes {dimension_semantics = [], scalar_prefetch = 0 : i64, scratch_operands = 0 : i64, tpu.core_type = #tpu.core_type<tc>} {
    %c0 = arith.constant 0 : index
    %c0_0 = arith.constant 0 : index
    %0 = vector.load %arg0[%c0, %c0_0] : memref<8x4xf32, #tpu.memory_space<vmem>>, vector<8x4xf32>
    %c0_1 = arith.constant 0 : index
    %c0_2 = arith.constant 0 : index
    %1 = vector.load %arg1[%c0_1, %c0_2] : memref<8x128xf32, #tpu.memory_space<vmem>>, vector<4x36xf32>
    %c4 = arith.constant 4 : index
    %c0_3 = arith.constant 0 : index
    %2 = vector.load %arg1[%c4, %c0_3] : memref<8x128xf32, #tpu.memory_space<vmem>>, vector<1x36xf32>
    %c5 = arith.constant 5 : index
    %c0_4 = arith.constant 0 : index
    %3 = vector.load %arg1[%c5, %c0_4] : memref<8x128xf32, #tpu.memory_space<vmem>>, vector<1x2xf32>
    %c6 = arith.constant 6 : index
    %c0_5 = arith.constant 0 : index
    %4 = vector.load %arg1[%c6, %c0_5] : memref<8x128xf32, #tpu.memory_space<vmem>>, vector<2x36xf32>
    %5 = vector.extract_strided_slice %0 {offsets = [0, 0], sizes = [8, 1], strides = [1, 1]} : vector<8x4xf32> to vector<8x1xf32>
    %6 = vector.extract_strided_slice %1 {offsets = [0, 0], sizes = [1, 36], strides = [1, 1]} : vector<4x36xf32> to vector<1x36xf32>
    %7 = vector.broadcast %5 : vector<8x1xf32> to vector<8x36xf32>
    %8 = vector.broadcast %6 : vector<1x36xf32> to vector<8x36xf32>
    %9 = arith.mulf %7, %8 : vector<8x36xf32>
    %10 = vector.extract_strided_slice %0 {offsets = [0, 1], sizes = [8, 1], strides = [1, 1]} : vector<8x4xf32> to vector<8x1xf32>
    %11 = vector.extract_strided_slice %1 {offsets = [1, 0], sizes = [1, 36], strides = [1, 1]} : vector<4x36xf32> to vector<1x36xf32>
    %12 = vector.broadcast %10 : vector<8x1xf32> to vector<8x36xf32>
    %13 = vector.broadcast %11 : vector<1x36xf32> to vector<8x36xf32>
    %14 = arith.mulf %12, %13 : vector<8x36xf32>
    %15 = vector.extract_strided_slice %0 {offsets = [0, 2], sizes = [8, 1], strides = [1, 1]} : vector<8x4xf32> to vector<8x1xf32>
    %16 = vector.extract_strided_slice %1 {offsets = [2, 0], sizes = [1, 36], strides = [1, 1]} : vector<4x36xf32> to vector<1x36xf32>
    %17 = vector.broadcast %15 : vector<8x1xf32> to vector<8x36xf32>
    %18 = vector.broadcast %16 : vector<1x36xf32> to vector<8x36xf32>
    %19 = arith.mulf %17, %18 : vector<8x36xf32>
    %20 = vector.extract_strided_slice %0 {offsets = [0, 3], sizes = [8, 1], strides = [1, 1]} : vector<8x4xf32> to vector<8x1xf32>
    %21 = vector.extract_strided_slice %1 {offsets = [3, 0], sizes = [1, 36], strides = [1, 1]} : vector<4x36xf32> to vector<1x36xf32>
    %22 = vector.broadcast %20 : vector<8x1xf32> to vector<8x36xf32>
    %23 = vector.broadcast %21 : vector<1x36xf32> to vector<8x36xf32>
    %24 = arith.mulf %22, %23 : vector<8x36xf32>
    %25 = arith.addf %9, %14 : vector<8x36xf32>
    %26 = arith.addf %19, %24 : vector<8x36xf32>
    %27 = arith.addf %25, %26 : vector<8x36xf32>
    %28 = vector.broadcast %2 : vector<1x36xf32> to vector<8x36xf32>
    %29 = arith.addf %27, %28 : vector<8x36xf32>
    %cst = arith.constant 0.000000e+00 : f32
    %30 = vector.broadcast %cst : f32 to vector<8x36xf32>
    %31 = arith.maximumf %29, %30 : vector<8x36xf32>
    %32 = vector.extract_strided_slice %4 {offsets = [0, 0], sizes = [1, 36], strides = [1, 1]} : vector<2x36xf32> to vector<1x36xf32>
    %33 = vector.broadcast %32 : vector<1x36xf32> to vector<8x36xf32>
    %34 = arith.mulf %31, %33 : vector<8x36xf32>
    %cst_6 = arith.constant dense<0.000000e+00> : vector<8xf32>
    %35 = vector.multi_reduction <add>, %34, %cst_6 [1] : vector<8x36xf32> to vector<8xf32>
    %36 = vector.shape_cast %35 : vector<8xf32> to vector<8x1xf32>
    %37 = vector.extract_strided_slice %4 {offsets = [1, 0], sizes = [1, 36], strides = [1, 1]} : vector<2x36xf32> to vector<1x36xf32>
    %38 = vector.broadcast %37 : vector<1x36xf32> to vector<8x36xf32>
    %39 = arith.mulf %31, %38 : vector<8x36xf32>
    %cst_7 = arith.constant dense<0.000000e+00> : vector<8xf32>
    %40 = vector.multi_reduction <add>, %39, %cst_7 [1] : vector<8x36xf32> to vector<8xf32>
    %41 = vector.shape_cast %40 : vector<8xf32> to vector<8x1xf32>
    %42 = tpu.concatenate %36, %41 in 1 : vector<8x1xf32>, vector<8x1xf32> -> vector<8x2xf32>
    %43 = vector.broadcast %3 : vector<1x2xf32> to vector<8x2xf32>
    %44 = arith.addf %42, %43 : vector<8x2xf32>
    %cst_8 = arith.constant dense<0xFF800000> : vector<2xf32>
    %45 = vector.multi_reduction <maximumf>, %44, %cst_8 [0] : vector<8x2xf32> to vector<2xf32>
    %46 = vector.shape_cast %45 : vector<2xf32> to vector<1x2xf32>
    %47 = vector.broadcast %46 : vector<1x2xf32> to vector<8x2xf32>
    %48 = arith.subf %44, %47 : vector<8x2xf32>
    %49 = math.exp %48 : vector<8x2xf32>
    %cst_9 = arith.constant dense<0.000000e+00> : vector<2xf32>
    %50 = vector.multi_reduction <add>, %49, %cst_9 [0] : vector<8x2xf32> to vector<2xf32>
    %51 = vector.shape_cast %50 : vector<2xf32> to vector<1x2xf32>
    %52 = vector.broadcast %51 : vector<1x2xf32> to vector<8x2xf32>
    %53 = arith.divf %49, %52 : vector<8x2xf32>
    %c0_10 = arith.constant 0 : index
    %c0_11 = arith.constant 0 : index
    %54 = vector.load %arg2[%c0_10, %c0_11] : memref<8x2xf32, #tpu.memory_space<vmem>>, vector<8x2xf32>
    tpu.vector_store %arg2[%c0_10, %c0_11], %53 {strides = array<i32>} : memref<8x2xf32, #tpu.memory_space<vmem>>, vector<8x2xf32>,
    return
  }
}

</mosaic_0001>

<bundles_post_ra>
// kernel: tpu_custom_call.1
= control target key start
LH: loop header
LB: loop body
LE: loop exit
PB: predicated region body
PF: predicated region fallthrough
CT: control target
= control target key end

     0   :  { %v126_v0 = vmov 2   ;;  %v127_v1 = vmov 0   ;;  %v128_v3 = vmov 3   ;;  %v129_v4 = vmov 1   ;;  %s166_s0 = inlined_call_operand.vmem [shape: f32[8,4], index: 0, kind: input, shape index: {}]   ;;  %s167_s1 = inlined_call_operand.vmem [shape: f32[8,128], index: 1, kind: input, shape index: {}]   ;;  %s168_s2 = inlined_call_operand.vmem [shape: f32[8,2], index: 2, kind: output, shape index: {}]  }
   0x1   :  { %119 = vset.pattern.permute.xlu1 %v126_v0  ;;  %117 = vset.pattern.permute.xlu0 %v127_v1  ;;  %v11_v2 = vld [vmem:[%s166_s0] sm:$0xff]  ;;  %v21_v5 = vlaneseq  ;;  %vm67_vm0 = vcmask 293888   ;;  %vm79_vm1 = vcmask 7168   ;;  %vm86_vm2 = vcmask 15360  }
   0x2   :  { %36 = vperm.xlu1 %119, %v11_v2   ;;  %18 = vperm.xlu0 %117, %v11_v2   ;;  %v12_v11 = vld [vmem:[%s167_s1] sm:$0xf]  ;;  %v111_v26 = vld [vmem:[%s167_s1 + $0x4] ss:$0 sm:$0xff]  ;;  %v15_v27 = vld [vmem:[%s167_s1 + $0x6] sm:$0x3] }
   0x3   :  { %v22_v6 = vshrl.u32 %v21_v5, 7  ;;  %v112_v37 = vld [vmem:[%s167_s1 + $0x5] ss:$0 sm:$0xff] }
   0x5   :  { %v41_v7 = vsub.s32 2, %v22_v6  ;;  %v23_v8 = vsub.s32 0, %v22_v6  ;;  %v50_v9 = vsub.s32 3, %v22_v6  ;;  %v32_v10 = vsub.s32 1, %v22_v6 }
   0x6   :  { %120 = vset.pattern.permute.xlu1 %v128_v3  ;;  %118 = vset.pattern.permute.xlu0 %v129_v4 }
   0x7   :  { %45 = vperm.xlu1 %120, %v11_v2   ;;  %27 = vperm.xlu0 %118, %v11_v2   ;;  %v42_v14 = vrot.slane %v12_v11, %v41_v7  ;;  %v24_v15 = vrot.slane %v12_v11, %v23_v8  ;;  %v51_v16 = vrot.slane %v12_v11, %v50_v9 }
   0x8   :  { %v33_v17 = vrot.slane %v12_v11, %v32_v10  ;;  %v74_v30 = vrot.slane %v15_v27, %v32_v10  ;;  %v65_v31 = vrot.slane %v15_v27, %v23_v8 }
   0xb   :  { %121 = vset.pattern.permute.xlu0 %v128_v3 }
  0x7d   :  { %v37_v12 = vpop.permute.xlu1 %36  ;;  %v19_v13 = vpop.permute.xlu0 %18 }
  0x7e   :  { %v43_v20 = vmul.f32 %v42_v14, %v37_v12  ;;  %v25_v21 = vmul.f32 %v24_v15, %v19_v13 }
  0x82   :  { %v46_v18 = vpop.permute.xlu1 %45  ;;  %v28_v19 = vpop.permute.xlu0 %27 }
  0x83   :  { %v52_v22 = vmul.f32 %v51_v16, %v46_v18  ;;  %v34_v23 = vmul.f32 %v33_v17, %v28_v19 }
  0x85   :  { %v54_v24 = vadd.f32 %v52_v22, %v43_v20  ;;  %v53_v25 = vadd.f32 %v34_v23, %v25_v21 }
  0x87   :  { %v55_v28 = vadd.f32 %v54_v24, %v53_v25 }
  0x89   :  { %v60_v29 = vadd.f32 %v111_v26, %v55_v28 }
  0x8b   :  { %v61_v32 = vmax.f32 %v60_v29, 0.0 }
  0x8d   :  { %v75_v33 = vmul.f32 %v74_v30, %v61_v32  ;;  %v66_v34 = vmul.f32 %v65_v31, %v61_v32 }
  0x8f   :  { %v76_v35 = vsel %vm67_vm0, %v75_v33, 0.0  ;;  %v68_v36 = vsel %vm67_vm0, %v66_v34, 0.0 }
  0x90   :  { %77 = vadd.xlane.f32.xlu0 %v76_v35  ;;  %69 = vadd.xlane.f32.xlu1 %v68_v36 }
 0x119   :  { %v78_v38 = vpop.xlane.xlu0 %77  ;;  %v70_v39 = vpop.xlane.xlu1 %69 }
 0x11a   :  { %v80_v40 = vsel %vm79_vm1, %v70_v39, %v78_v38 }
 0x11b   :  { %v85_v41 = vadd.f32 %v112_v37, %v80_v40 }
 0x11d   :  { %v87_v42 = vsel %vm86_vm2, %v85_v41, -inf }
 0x11e   :  { %v88_v43 = vrot.slane %v87_v42, 4 }
 0x120   :  { %v89_v44 = vmax.f32 %v87_v42, %v88_v43 }
 0x122   :  { %v90_v45 = vrot.slane %v89_v44, 2 }
 0x124   :  { %v91_v46 = vmax.f32 %v89_v44, %v90_v45 }
 0x126   :  { %v92_v47 = vrot.slane %v91_v46, 1 }
 0x128   :  { %v93_v48 = vmax.f32 %v91_v46, %v92_v47 }
 0x12a   :  { %v94_v49 = vsub.f32 %v85_v41, %v93_v48 }
 0x12c   :  { %v95_v50 = vmul.f32 1.442695, %v94_v49 }
 0x12e   :  { %122 = vpow2.f32 %v95_v50 }
 0x13b   :  { %v123_v51 = vpop.eup %122 }
 0x13c   :  { %v97_v52 = vsel %vm86_vm2, %v123_v51, 0.0 }
 0x13d   :  { %v98_v53 = vrot.slane %v97_v52, 4 }
 0x13f   :  { %v99_v54 = vadd.f32 %v98_v53, %v97_v52 }
 0x141   :  { %v100_v55 = vrot.slane %v99_v54, 2 }
 0x143   :  { %v101_v56 = vadd.f32 %v100_v55, %v99_v54 }
 0x145   :  { %v102_v57 = vrot.slane %v101_v56, 1 }
 0x147   :  { %v103_v58 = vadd.f32 %v102_v57, %v101_v56 }
 0x149   :  { %124 = vrcp.f32 %v103_v58 }
 0x156   :  { %v125_v59 = vpop.eup %124 }
 0x157   :  { %v105_v60 = vmul.f32 %v125_v59, %v123_v51 }
 0x159   :  { %106 = vst.msk [vmem:[%s168_s2] sm:$0xff] %vm86_vm2, %v105_v60 }

</bundles_post_ra>
